<compile_context>
chip_gen: v6e
topology: v6e:2x2x1
jax: 0.10.0
libtpu: 0.0.40
codegen_flags: <defaults>
</compile_context>

<pallas_src>
import functools

import jax
import jax.numpy as jnp
from jax.experimental import pallas as pl
from jax.experimental.pallas import tpu as pltpu

_LANE = 128


def _ce_partial_kernel(logits_ref, target_ref, mask_ref,
                       sum_lm_ref, sum_m_ref, *, threshold):
    # logits_ref: [1, 2, tR, 128] (native dtype), target_ref: [1, tR, 128] i32,
    # mask_ref: [1, tR, 128]; outputs: [1, 1, 1] f32 accumulated over axis 1.
    j = pl.program_id(1)

    l0 = logits_ref[0, 0].astype(jnp.float32)
    l1 = logits_ref[0, 1].astype(jnp.float32)
    t = target_ref[0]
    m = mask_ref[0].astype(jnp.float32)

    d = l1 - l0
    # s = d when target == 0 else -d (non-zero targets map to class 1,
    # matching nll_loss on {0, 1} targets).
    s = jnp.where(t == 0, d, -d)
    z = jnp.exp(-jnp.abs(s))                       # one exp per element (EUP)
    inv1pz = pl.reciprocal(1.0 + z, approx=True)   # EUP slot, nearly free
    # delta = |one_hot(target, 2)[:, 0] - softmax(logits)[:, 0]| == sigmoid(s)
    delta = jnp.where(s >= 0, inv1pz, z * inv1pz)
    # -log(p_target) = softplus(s) = max(s, 0) + log(1 + exp(-|s|))
    loss_elem = jnp.maximum(s, 0.0) + jnp.log(1.0 + z)

    # mask[delta <= threshold] = 0   (padded pixels already carry mask == 0)
    mask_thr = jnp.where(delta <= threshold, 0.0, m)

    part_lm = jnp.sum(loss_elem * mask_thr)
    part_m = jnp.sum(mask_thr)

    @pl.when(j == 0)
    def _():
        sum_lm_ref[...] = jnp.zeros_like(sum_lm_ref)
        sum_m_ref[...] = jnp.zeros_like(sum_m_ref)

    sum_lm_ref[...] += part_lm.reshape(1, 1, 1)
    sum_m_ref[...] += part_m.reshape(1, 1, 1)


def _ce_partial_sums(logits_nchw, target, mask, threshold, max_tile_rows=1024):
    """Returns (sum(loss*mask_thr), sum(mask_thr)) for one pyramid scale."""
    B, C, H, W = logits_nchw.shape
    assert C == 2, "CEwithThreshold assumes 2 classes"
    hw = H * W

    # Free reshapes only (no HBM transpose): class planes stay contiguous.
    logits = logits_nchw.reshape(B, 2, hw)
    tgt = target.reshape(B, hw).astype(jnp.int32)
    msk = mask.reshape(B, hw)
    if msk.dtype == jnp.bool_:
        msk = msk.astype(jnp.float32)

    # Lane-dense layout: pad flattened pixels to a multiple of the block size,
    # then view as [rows, 128].  Padded pixels have mask == 0 so they add
    # nothing to either partial sum (loss_elem stays finite for zero logits).
    max_block = max_tile_rows * _LANE
    if hw <= max_block:
        hw_pad = -(-hw // _LANE) * _LANE
        tile_rows = hw_pad // _LANE          # full-extent block (any size OK)
    else:
        hw_pad = -(-hw // max_block) * max_block
        tile_rows = max_tile_rows            # multiple of 8, ~2 MiB/step f32
    if hw_pad != hw:
        pad = hw_pad - hw
        logits = jnp.pad(logits, ((0, 0), (0, 0), (0, pad)))
        tgt = jnp.pad(tgt, ((0, 0), (0, pad)))
        msk = jnp.pad(msk, ((0, 0), (0, pad)))
    rows = hw_pad // _LANE
    n_tiles = rows // tile_rows

    logits4 = logits.reshape(B, 2, rows, _LANE)
    tgt3 = tgt.reshape(B, rows, _LANE)
    msk3 = msk.reshape(B, rows, _LANE)

    kernel = functools.partial(_ce_partial_kernel, threshold=float(threshold))
    sum_lm, sum_m = pl.pallas_call(
        kernel,
        out_shape=(jax.ShapeDtypeStruct((B, 1, 1), jnp.float32),
                   jax.ShapeDtypeStruct((B, 1, 1), jnp.float32)),
        grid=(B, n_tiles),
        in_specs=[
            pl.BlockSpec((1, 2, tile_rows, _LANE), lambda b, j: (b, 0, j, 0)),
            pl.BlockSpec((1, tile_rows, _LANE), lambda b, j: (b, j, 0)),
            pl.BlockSpec((1, tile_rows, _LANE), lambda b, j: (b, j, 0)),
        ],
        out_specs=(
            pl.BlockSpec((1, 1, 1), lambda b, j: (b, 0, 0)),
            pl.BlockSpec((1, 1, 1), lambda b, j: (b, 0, 0)),
        ),
        compiler_params=pltpu.CompilerParams(
            dimension_semantics=("parallel", "arbitrary")),
    )(logits4, tgt3, msk3)
    # Combine per-batch partials in JAX (tiny).
    return jnp.sum(sum_lm), jnp.sum(sum_m)


def ce_with_threshold(logits_nchw, target, mask, threshold=0.0):
    """Single-scale CEwithThreshold.forward (scalar mean loss)."""
    s_lm, s_m = _ce_partial_sums(logits_nchw, target, mask, threshold)
    # mean(loss * mask * N / sum(mask)) == sum(loss * mask) / sum(mask).
    # Same divide-by-zero hazard as the PyTorch reference when every pixel is
    # below threshold (sum(mask_thr) == 0).
    return s_lm / s_m


def multi_scale_cross_entropy_loss(outputs, targets, masks, threshold=0.0):
    """MultiScaleCrossEntropyLoss.forward: sum_i CE(out[i], tgt[i], mask[i]) * 4**i."""
    assert len(outputs) <= len(targets)
    loss = jnp.float32(0.0)
    for i in range(len(outputs)):
        s_lm, s_m = _ce_partial_sums(outputs[i], targets[i], masks[i], threshold)
        loss = loss + (s_lm / s_m) * (4 ** i)
    return loss


# ---------- pure-JAX reference (correctness check) ----------
def _ref_single(logits, target, mask, threshold):
    B, C, H, W = logits.shape
    soft = jax.nn.softmax(logits.astype(jnp.float32), axis=1)
    onehot0 = (target == 0).astype(jnp.float32)           # channel 0 of one_hot
    delta = jnp.abs(onehot0 - soft[:, 0])
    mask_new = jnp.where(delta <= threshold, 0.0, mask.astype(jnp.float32))
    mask_norm = mask_new * (B * H * W) / jnp.sum(mask_new)
    logp = jnp.log(soft)
    gathered = jnp.take_along_axis(logp, target[:, None].astype(jnp.int32),
                                   axis=1)[:, 0]
    loss = (-gathered) * mask_norm
    return jnp.mean(loss)


def _ref_multi(outputs, targets, masks, threshold=0.0):
    loss = jnp.float32(0.0)
    for i in range(len(outputs)):
        loss = loss + _ref_single(outputs[i], targets[i], masks[i],
                                  threshold) * (4 ** i)
    return loss


if __name__ == "__main__":
    key = jax.random.PRNGKey(0)
    B = 2
    scales = [(16, 16), (8, 8)]   # two pyramid levels (exercises lane padding)

    outputs, targets, masks = [], [], []
    for (H, W) in scales:
        key, k1, k2, k3 = jax.random.split(key, 4)
        outputs.append(jax.random.normal(k1, (B, 2, H, W), dtype=jnp.float32))
        targets.append(jax.random.randint(k2, (B, H, W), 0, 2, dtype=jnp.int32))
        masks.append(jax.random.bernoulli(k3, 0.7, (B, H, W)).astype(jnp.float32))

    loss = multi_scale_cross_entropy_loss(outputs, targets, masks, threshold=0.0)
    loss = jax.block_until_ready(loss)

    ref = jax.block_until_ready(_ref_multi(outputs, targets, masks, threshold=0.0))
    assert jnp.allclose(loss, ref, rtol=1e-5, atol=1e-5), (loss, ref)

    print("KERNEL_OK")
</pallas_src>

<mosaic_0001>
module attributes {stable_mosaic.version = 11 : i64} {
  func.func @_ce_partial_kernel(%arg0: i32, %arg1: i32, %arg2: memref<1x2x2x128xf32, #tpu.memory_space<vmem>>, %arg3: memref<1x2x128xi32, #tpu.memory_space<vmem>>, %arg4: memref<1x2x128xf32, #tpu.memory_space<vmem>>, %arg5: memref<1x1x1xf32, #tpu.memory_space<vmem>>, %arg6: memref<1x1x1xf32, #tpu.memory_space<vmem>>) attributes {dimension_semantics = [#tpu.dimension_semantics<parallel>, #tpu.dimension_semantics<arbitrary>], iteration_bounds = array<i64: 2, 1>, scalar_prefetch = 0 : i64, scratch_operands = 0 : i64, tpu.core_type = #tpu.core_type<tc>, window_params = [{transform_indices = @transform_0, window_bounds = array<i64: 1, 2, 2, 128>}, {transform_indices = @transform_1, window_bounds = array<i64: 1, 2, 128>}, {transform_indices = @transform_2, window_bounds = array<i64: 1, 2, 128>}, {transform_indices = @transform_3, window_bounds = array<i64: 1, 1, 1>}, {transform_indices = @transform_4, window_bounds = array<i64: 1, 1, 1>}]} {
    %c0 = arith.constant 0 : index
    %c0_0 = arith.constant 0 : index
    %c0_1 = arith.constant 0 : index
    %c0_2 = arith.constant 0 : index
    %0 = vector.load %arg2[%c0, %c0_0, %c0_1, %c0_2] : memref<1x2x2x128xf32, #tpu.memory_space<vmem>>, vector<1x1x2x128xf32>
    %1 = vector.shape_cast %0 : vector<1x1x2x128xf32> to vector<2x128xf32>
    %c0_3 = arith.constant 0 : index
    %c1 = arith.constant 1 : index
    %c0_4 = arith.constant 0 : index
    %c0_5 = arith.constant 0 : index
    %2 = vector.load %arg2[%c0_3, %c1, %c0_4, %c0_5] : memref<1x2x2x128xf32, #tpu.memory_space<vmem>>, vector<1x1x2x128xf32>
    %3 = vector.shape_cast %2 : vector<1x1x2x128xf32> to vector<2x128xf32>
    %c0_6 = arith.constant 0 : index
    %c0_7 = arith.constant 0 : index
    %c0_8 = arith.constant 0 : index
    %4 = vector.load %arg3[%c0_6, %c0_7, %c0_8] : memref<1x2x128xi32, #tpu.memory_space<vmem>>, vector<1x2x128xi32>
    %5 = vector.shape_cast %4 : vector<1x2x128xi32> to vector<2x128xi32>
    %c0_9 = arith.constant 0 : index
    %c0_10 = arith.constant 0 : index
    %c0_11 = arith.constant 0 : index
    %6 = vector.load %arg4[%c0_9, %c0_10, %c0_11] : memref<1x2x128xf32, #tpu.memory_space<vmem>>, vector<1x2x128xf32>
    %7 = vector.shape_cast %6 : vector<1x2x128xf32> to vector<2x128xf32>
    %8 = arith.subf %3, %1 : vector<2x128xf32>
    %c0_i32 = arith.constant 0 : i32
    %9 = vector.broadcast %c0_i32 : i32 to vector<2x128xi32>
    %10 = arith.cmpi eq, %5, %9 : vector<2x128xi32>
    %cst = arith.constant 0.000000e+00 : f32
    %11 = vector.broadcast %cst : f32 to vector<2x128xf32>
    %12 = arith.subf %11, %8 : vector<2x128xf32>
    %13 = arith.select %10, %8, %12 : vector<2x128xi1>, vector<2x128xf32>
    %14 = math.absf %13 : vector<2x128xf32>
    %cst_12 = arith.constant 0.000000e+00 : f32
    %15 = vector.broadcast %cst_12 : f32 to vector<2x128xf32>
    %16 = arith.subf %15, %14 : vector<2x128xf32>
    %17 = math.exp %16 : vector<2x128xf32>
    %cst_13 = arith.constant 1.000000e+00 : f32
    %18 = vector.broadcast %cst_13 : f32 to vector<2x128xf32>
    %19 = arith.addf %18, %17 : vector<2x128xf32>
    %20 = tpu.reciprocal %19 {approx = true} : vector<2x128xf32> -> vector<2x128xf32>
    %cst_14 = arith.constant 0.000000e+00 : f32
    %21 = vector.broadcast %cst_14 : f32 to vector<2x128xf32>
    %22 = arith.cmpf oge, %13, %21 : vector<2x128xf32>
    %23 = arith.mulf %17, %20 : vector<2x128xf32>
    %24 = arith.select %22, %20, %23 : vector<2x128xi1>, vector<2x128xf32>
    %cst_15 = arith.constant 0.000000e+00 : f32
    %25 = vector.broadcast %cst_15 : f32 to vector<2x128xf32>
    %26 = arith.maximumf %13, %25 : vector<2x128xf32>
    %cst_16 = arith.constant 1.000000e+00 : f32
    %27 = vector.broadcast %cst_16 : f32 to vector<2x128xf32>
    %28 = arith.addf %27, %17 : vector<2x128xf32>
    %29 = math.log %28 : vector<2x128xf32>
    %30 = arith.addf %26, %29 : vector<2x128xf32>
    %cst_17 = arith.constant 0.000000e+00 : f32
    %31 = vector.broadcast %cst_17 : f32 to vector<2x128xf32>
    %32 = arith.cmpf ole, %24, %31 : vector<2x128xf32>
    %cst_18 = arith.constant 0.000000e+00 : f32
    %33 = vector.broadcast %cst_18 : f32 to vector<2x128xf32>
    %34 = arith.select %32, %33, %7 : vector<2x128xi1>, vector<2x128xf32>
    %35 = arith.mulf %30, %34 : vector<2x128xf32>
    %36 = vector.shape_cast %35 : vector<2x128xf32> to vector<1x2x128xf32>
    %cst_19 = arith.constant dense<0.000000e+00> : vector<1xf32>
    %37 = vector.multi_reduction <add>, %36, %cst_19 [1, 2] : vector<1x2x128xf32> to vector<1xf32>
    %38 = vector.shape_cast %37 : vector<1xf32> to vector<1x1x1xf32>
    %39 = vector.extract %38[0, 0, 0] : f32 from vector<1x1x1xf32>
    %40 = vector.shape_cast %34 : vector<2x128xf32> to vector<1x2x128xf32>
    %cst_20 = arith.constant dense<0.000000e+00> : vector<1xf32>
    %41 = vector.multi_reduction <add>, %40, %cst_20 [1, 2] : vector<1x2x128xf32> to vector<1xf32>
    %42 = vector.shape_cast %41 : vector<1xf32> to vector<1x1x1xf32>
    %43 = vector.extract %42[0, 0, 0] : f32 from vector<1x1x1xf32>
    %c0_i32_21 = arith.constant 0 : i32
    %44 = arith.cmpi eq, %arg1, %c0_i32_21 : i32
    %45 = arith.extui %44 : i1 to i32
    %c0_i32_22 = arith.constant 0 : i32
    %46 = arith.cmpi ne, %45, %c0_i32_22 : i32
    scf.if %46 {
      %cst_35 = arith.constant 0.000000e+00 : f32
      %55 = vector.broadcast %cst_35 : f32 to vector<1x1x1xf32>
      %c0_36 = arith.constant 0 : index
      %c0_37 = arith.constant 0 : index
      %c0_38 = arith.constant 0 : index
      %56 = vector.load %arg5[%c0_36, %c0_37, %c0_38] : memref<1x1x1xf32, #tpu.memory_space<vmem>>, vector<1x1x1xf32>
      tpu.vector_store %arg5[%c0_36, %c0_37, %c0_38], %55 {strides = array<i32>} : memref<1x1x1xf32, #tpu.memory_space<vmem>>, vector<1x1x1xf32>,
      %cst_39 = arith.constant 0.000000e+00 : f32
      %57 = vector.broadcast %cst_39 : f32 to vector<1x1x1xf32>
      %c0_40 = arith.constant 0 : index
      %c0_41 = arith.constant 0 : index
      %c0_42 = arith.constant 0 : index
      %58 = vector.load %arg6[%c0_40, %c0_41, %c0_42] : memref<1x1x1xf32, #tpu.memory_space<vmem>>, vector<1x1x1xf32>
      tpu.vector_store %arg6[%c0_40, %c0_41, %c0_42], %57 {strides = array<i32>} : memref<1x1x1xf32, #tpu.memory_space<vmem>>, vector<1x1x1xf32>,
    } else {
    }
    %c0_23 = arith.constant 0 : index
    %c0_24 = arith.constant 0 : index
    %c0_25 = arith.constant 0 : index
    %47 = vector.load %arg5[%c0_23, %c0_24, %c0_25] : memref<1x1x1xf32, #tpu.memory_space<vmem>>, vector<1x1x1xf32>
    %48 = vector.broadcast %39 : f32 to vector<1x1x1xf32>
    %49 = arith.addf %47, %48 : vector<1x1x1xf32>
    %c0_26 = arith.constant 0 : index
    %c0_27 = arith.constant 0 : index
    %c0_28 = arith.constant 0 : index
    %50 = vector.load %arg5[%c0_26, %c0_27, %c0_28] : memref<1x1x1xf32, #tpu.memory_space<vmem>>, vector<1x1x1xf32>
    tpu.vector_store %arg5[%c0_26, %c0_27, %c0_28], %49 {strides = array<i32>} : memref<1x1x1xf32, #tpu.memory_space<vmem>>, vector<1x1x1xf32>,
    %c0_29 = arith.constant 0 : index
    %c0_30 = arith.constant 0 : index
    %c0_31 = arith.constant 0 : index
    %51 = vector.load %arg6[%c0_29, %c0_30, %c0_31] : memref<1x1x1xf32, #tpu.memory_space<vmem>>, vector<1x1x1xf32>
    %52 = vector.broadcast %43 : f32 to vector<1x1x1xf32>
    %53 = arith.addf %51, %52 : vector<1x1x1xf32>
    %c0_32 = arith.constant 0 : index
    %c0_33 = arith.constant 0 : index
    %c0_34 = arith.constant 0 : index
    %54 = vector.load %arg6[%c0_32, %c0_33, %c0_34] : memref<1x1x1xf32, #tpu.memory_space<vmem>>, vector<1x1x1xf32>
    tpu.vector_store %arg6[%c0_32, %c0_33, %c0_34], %53 {strides = array<i32>} : memref<1x1x1xf32, #tpu.memory_space<vmem>>, vector<1x1x1xf32>,
    return
  }
  func.func @transform_0(%arg0: i32, %arg1: i32) -> (i32, i32, i32, i32) {
    %c0_i32 = arith.constant 0 : i32
    %c0_i32_0 = arith.constant 0 : i32
    %c0_i32_1 = arith.constant 0 : i32
    return %arg0, %c0_i32, %arg1, %c0_i32_0 : i32, i32, i32, i32
  }
  func.func @transform_1(%arg0: i32, %arg1: i32) -> (i32, i32, i32) {
    %c0_i32 = arith.constant 0 : i32
    %c0_i32_0 = arith.constant 0 : i32
    return %arg0, %arg1, %c0_i32 : i32, i32, i32
  }
  func.func @transform_2(%arg0: i32, %arg1: i32) -> (i32, i32, i32) {
    %c0_i32 = arith.constant 0 : i32
    %c0_i32_0 = arith.constant 0 : i32
    return %arg0, %arg1, %c0_i32 : i32, i32, i32
  }
  func.func @transform_3(%arg0: i32, %arg1: i32) -> (i32, i32, i32) {
    %c0_i32 = arith.constant 0 : i32
    %c0_i32_0 = arith.constant 0 : i32
    %c0_i32_1 = arith.constant 0 : i32
    return %arg0, %c0_i32, %c0_i32_0 : i32, i32, i32
  }
  func.func @transform_4(%arg0: i32, %arg1: i32) -> (i32, i32, i32) {
    %c0_i32 = arith.constant 0 : i32
    %c0_i32_0 = arith.constant 0 : i32
    %c0_i32_1 = arith.constant 0 : i32
    return %arg0, %c0_i32, %c0_i32_0 : i32, i32, i32
  }
}

</mosaic_0001>

<bundles_post_ra>
// kernel: tpu_custom_call.1
= control target key start
LH: loop header
LB: loop body
LE: loop exit
PB: predicated region body
PF: predicated region fallthrough
CT: control target
= control target key end

     0   :  { %s937_s0 = inlined_call_operand.hbm [shape: f32[2,2,2,128], index: 0, kind: input, shape index: {}]   ;;  %s938_s1 = inlined_call_operand.hbm [shape: s32[2,2,128], index: 1, kind: input, shape index: {}]   ;;  %s939_s2 = inlined_call_operand.hbm [shape: f32[2,2,128], index: 2, kind: input, shape index: {}]   ;;  %s940_s3 = inlined_call_operand.vmem [shape: f32[2,1,1], index: 3, kind: output, shape index: {0}]   ;;  %s941_s4 = inlined_call_operand.vmem [shape: f32[2,1,1], index: 4, kind: output, shape index: {1}]  }
   0x1   :  { %943 = sst [smem:[#allocation9_spill]] %s938_s1 }
   0x2   :  { %944 = sst [smem:[#allocation10_spill]] %s939_s2 }
   0x3   :  { %10 = vsyncpa [#allocation3], 0 }
   0x4   :  { %12 = vsyncpa [#allocation3 + $0x1], 0 }
   0x5   :  { %13 = vsyncpa [#allocation5], 0 }
   0x6   :  { %15 = vsyncpa [#allocation5 + $0x1], 0  ;;  %s784_s15 = smov 0   ;;  %s786_s16 = smov 0  }
   0x7   :  { %s788_s17 = smov 0   ;;  %s790_s18 = smov 0  }
   0x8   :  { %s792_s19 = smov 0   ;;  %s794_s20 = smov 0  }
   0x9 LB: > { %s942_s21 = sadd.s32 4294967295, %s751_s20   ;;  %s33_s22 = sadd.s32 1, %s747_s19  ;;  %s751_s20 = sphi %s794_s20, %s21_s20   ;;  %s747_s19 = sphi %s792_s19, %s955_s19   ;;  %s743_s18 = sphi %s790_s18, %s954_s18   ;;  %s739_s17 = sphi %s788_s17, %s953_s17   ;;  %s735_s16 = sphi %s786_s16, %s952_s16   ;;  %s731_s15 = sphi %s784_s15, %s951_s15  }
   0xa   : > { %p35_p0 = scmp.ge.s32.totalorder %s33_s22, 2  ;;  %s42_s23 = sadd.s32 1, %s739_s17 }
   0xb   : > { %p49_p1 = scmp.ne.s32.totalorder %s739_s17, %s735_s16  ;;  %p50_p2 = scmp.eq.s32.totalorder %s751_s20, 0 }
   0xc   : > { %s957_s22 = smov (%p35_p0, %s33_s22), 0  ;;  %p55_p4 = scmp.ne.s32.totalorder %s735_s16, %s731_s15 }
   0xd   : > { %p51_p3 = por %p50_p2, %p49_p1  ;;  %s37_s24 = ssub.s32 %s747_s19, %s957_s22 }
   0xe   : > { %p56_p5 = scmp.eq.s32.totalorder %s942_s21, 0  ;;  %p40_p6 = scmp.eq.s32.totalorder %s37_s24, 0 }
   0xf   : > { %p555_p8 = scmp.lt.s32.totalorder %s751_s20, 2  ;;  %s834_s27 = sand.u32 1, %s739_s17  }
  0x10   : > { %p825_p7 = por %p56_p5, %p55_p4  ;;  %s209_s29 = sand.u32 1, %s751_s20  }
  0x11   : > { %s831_s26 = scalar_select %p40_p6, %s739_s17, %s42_s23  }
  0x12   : > { %p836_p9 = pnand %p555_p8, %p51_p3  ;;  %s523_s30 = sshll.u32 %s834_s27, 1 }
  0x13   : > { %s524_s5 = sshll.u32 %s747_s19, 5  ;;  %s947_s1 = sld [smem:[#allocation9_spill]] }
  0x14   : > { %s213_s9 = scalar_lea.vmem [#allocation4], %s523_s30  ;;  %s848_s11 = scalar_lea.sflag [#allocation5], %s209_s29 }
  0x15   : > { %s221_s10 = sshll.u32 %s213_s9, 4  ;;  %p615_p10 = pneg %p836_p9  ;;  %s222_s10 = int_to_ptr.vmem [resolvable:$true] %s221_s10 }
  0x16   : > { %s626_s12 = scalar_lea.vmem %s222_s10, 32  ;;  %s753_s13 = smov [#allocation4]  }
  0x17   : > { %p627_p11 = scmp.ne.s32.totalorder %s222_s10, %s626_s12  ;;  %s631_s14 = sshll.u32 %s753_s13, 4  ;;  %s632_s14 = int_to_ptr.vmem [resolvable:$false] %s631_s14 }
  0x18   : > { %s633_s15 = scalar_lea.vmem %s632_s14, 64  ;;  %p634_p0 = scmp.lt.s32.totalorder %s222_s10, %s632_s14 }
  0x19   : > { %s219_s8 = scalar_lea.hbm %s947_s1, %s524_s5  ;;  %p629_p12 = pnand %p627_p11, %p615_p10 }
  0x1a   : > { %p635_p1 = scmp.lt.s32.totalorder %s633_s15, %s626_s12 }
  0x1b   : > { %p630_p13 = pneg %p629_p12 }
  0x1c   : > { %p636_p2 = por %p635_p1, %p634_p0 }
  0x1e   : > { %p637_p3 = pnand %p636_p2, %p630_p13 }
  0x20   : > { %640 = shalt.err (!%p637_p3)
}
  0x21   : > { %551 = dma.hbm_to_vmem [thread:$0]  (!%p836_p9), %s219_s8, 32, %s222_s10, %s848_s11  }
  0x22   : > { %s948_s2 = sld [smem:[#allocation10_spill]]  ;;  %p527_p4 = scmp.ge.s32.totalorder %s751_s20, 1 }
  0x23   : > { %p245_p5 = scmp.lt.s32.totalorder %s751_s20, 3  ;;  %s520_s7 = sshll.u32 %s834_s27, 2 }
  0x24   : > { %s534_s9 = sshll.u32 %s747_s19, 6  ;;  %s191_s15 = scalar_lea.vmem [#allocation2], %s520_s7 }
  0x25   : > { %p865_p6 = pnand %p527_p4, %p245_p5  ;;  %s198_s14 = scalar_lea.hbm %s937_s0, %s534_s9 }
  0x26   : > { %s199_s8 = sshll.u32 %s191_s15, 4  ;;  %s232_s10 = scalar_lea.vmem [#allocation6], %s523_s30  ;;  %s200_s8 = int_to_ptr.vmem [resolvable:$true] %s199_s8 }
  0x27   : > { %s240_s23 = sshll.u32 %s232_s10, 4  ;;  %s654_s24 = scalar_lea.vmem %s200_s8, 64  ;;  %s241_s23 = int_to_ptr.vmem [resolvable:$true] %s240_s23 }
  0x28   : > { %s861_s29 = scalar_lea.hbm %s948_s2, %s524_s5  ;;  %s188_s5 = scalar_lea.sflag [#allocation3], %s834_s27 }
  0x29   : > { %p655_p8 = scmp.ne.s32.totalorder %s200_s8, %s654_s24  ;;  %s754_s21 = smov [#allocation2]  }
  0x2a   : > { %s659_s1 = sshll.u32 %s754_s21, 4  ;;  %s660_s1 = int_to_ptr.vmem [resolvable:$false] %s659_s1 }
  0x2b   : > { %p657_p11 = pnand %p655_p8, %p615_p10  ;;  %s661_s2 = scalar_lea.vmem %s660_s1, 128 }
  0x2c   : > { %p662_p13 = scmp.lt.s32.totalorder %s200_s8, %s660_s1  ;;  %p663_p0 = scmp.lt.s32.totalorder %s661_s2, %s654_s24 }
  0x2d   : > { %p658_p12 = pneg %p657_p11 }
  0x2e   : > { %p664_p1 = por %p663_p0, %p662_p13 }
  0x30   : > { %p665_p2 = pnand %p664_p1, %p658_p12 }
  0x32   : > { %668 = shalt.err (!%p665_p2)
}
  0x33   : > { %s755_s7 = smov 32   ;;  %s756_s30 = smov 2  }
  0x34   : > { %548 = dma.hbm_to_vmem [thread:$0]  (!%p836_p9), %s198_s14, 64, %s200_s8, %s188_s5, %s755_s7, %s755_s7, %s756_s30  }
  0x35   : > { %s682_s27 = scalar_lea.vmem %s241_s23, 32  ;;  %s757_s21 = smov [#allocation6]  }
  0x36   : > { %p683_p3 = scmp.ne.s32.totalorder %s241_s23, %s682_s27  ;;  %s687_s9 = sshll.u32 %s757_s21, 4  ;;  %s688_s9 = int_to_ptr.vmem [resolvable:$false] %s687_s9 }
  0x37   : > { %s689_s1 = scalar_lea.vmem %s688_s9, 64  ;;  %p690_p8 = scmp.lt.s32.totalorder %s241_s23, %s688_s9 }
  0x38   : > { %p685_p4 = pnand %p683_p3, %p615_p10  ;;  %p691_p11 = scmp.lt.s32.totalorder %s689_s1, %s682_s27 }
  0x3a   : > { %p686_p5 = pneg %p685_p4  ;;  %p692_p12 = por %p691_p11, %p690_p8 }
  0x3c   : > { %p693_p13 = pnand %p692_p12, %p686_p5 }
  0x3e   : > { %696 = shalt.err (!%p693_p13)
}
  0x3f   : > { %554 = dma.hbm_to_vmem [thread:$0]  (!%p836_p9), %s861_s29, 32, %s241_s23, %s848_s11  }
  0x40   : > { %249 = sbr.rel (%p865_p6) target bundleno = 332 (0x14c), region = 32  ;;  %s892_s2 = sand.u32 (!%p865_p6), 1, %s735_s16  }
  0x41   : > { %s528_s12 = sshll.u32 (!%p865_p6), %s892_s2, 2  ;;  %s252_s13 = scalar_lea.sflag (!%p865_p6), [#allocation3], %s892_s2 }
  0x42   : > { %s255_s14 = scalar_lea.vmem (!%p865_p6), [#allocation2], %s528_s12 }
  0x45   : > { %722 = dma.done.wait (%p825_p7), %s252_s13, 64  }
  0x46   : > { %724 = vsyncadd (%p825_p7), %s252_s13, 4294967232  ;;  %s950_s28 = sadd.s32 4294967295, %s751_s20   ;;  %s529_s29 = sshll.u32 %s892_s2, 1 }
  0x47   : > { %s260_s11 = sand.u32 1, %s950_s28   ;;  %s264_s15 = scalar_lea.vmem [#allocation4], %s529_s29 }
  0x48   : > { %s261_s6 = scalar_lea.sflag [#allocation5], %s260_s11 }
  0x49   : > { %726 = dma.done.wait (%p825_p7), %s261_s6, 64  }
  0x4a   : > { %728 = vsyncadd (%p825_p7), %s261_s6, 4294967232  ;;  %v315_v0 = vld [vmem:[%s255_s14] sm:$0x3]  ;;  %v531_v1 = vld [vmem:[%s255_s14 + $0x2] sm:$0x3]  ;;  %s273_s25 = scalar_lea.vmem [#allocation6], %s529_s29 }
  0x4b   : > { %v318_v2 = vld [vmem:[%s264_s15] sm:$0x3]  ;;  %v320_v3 = vsub.f32 %v531_v1, %v315_v0  ;;  %v319_v15 = vld [vmem:[%s273_s25] sm:$0x3]  ;;  %vm340_vm3 = vcmask 1041408   ;;  %p309_p7 = scmp.lt.s32.totalorder %s743_s18, 1 }
  0x4c   : > { %vm321_vm0 = vcmp.eq.s32.totalorder %v318_v2, 0  ;;  %vm365_vm4 = vcmask 0   ;;  %v758_v23 = vmov 0.0  }
  0x4d   : > { %v322_v4 = vsub.f32 0.0, %v320_v3  ;;  %s959_s18 = smov (!%p309_p7, %s743_s18), 1 }
  0x4e   : > { %s311_s23 = scalar_lea.vmem %s940_s3, %s959_s18  ;;  %s314_s7 = scalar_lea.vmem %s941_s4, %s959_s18 }
  0x4f   : > { %v323_v5 = vsel %vm321_vm0, %v320_v3, %v322_v4  ;;  %366 = vst.msk [vmem:[%s311_s23] sm:$0x1] %vm365_vm4, %v758_v23  ;;  %367 = vst.msk [vmem:[%s314_s7] sm:$0x1] %vm365_vm4, %v758_v23 }
  0x50   : > { %v324_v6 = vand.u32 2147483647, %v323_v5  ;;  %vm330_vm1 = vcmp.ge.f32.partialorder %v323_v5, 0.0  ;;  %v333_v12 = vmax.f32 %v323_v5, 0.0 }
  0x52   : > { %v325_v7 = vsub.f32 0.0, %v324_v6 }
  0x54   : > { %v326_v8 = vmul.f32 1.442695, %v325_v7 }
  0x56   : > { %607 = vpow2.f32 %v326_v8  ;;  %v368_v38 = vld [vmem:[%s311_s23] sm:$0x1] }
  0x57   : > { %v373_v41 = vld [vmem:[%s314_s7] sm:$0x1] }
  0x63   : > { %v608_v9 = vpop.eup %607 }
  0x64   : > { %v328_v10 = vadd.f32 1.0, %v608_v9 }
  0x66   : > { %609 = vrcp.f32 %v328_v10 }
  0x67   : > { %611 = vlog2.f32 %v328_v10 }
  0x73   : > { %v610_v11 = vpop.eup %609 }
  0x74   : > { %v612_v13 = vpop.eup %611  ;;  %v331_v14 = vmul.f32 %v610_v11, %v608_v9 }
  0x75   : > { %v335_v16 = vmul.f32 0.6931472, %v612_v13 }
  0x76   : > { %v332_v17 = vsel %vm330_vm1, %v610_v11, %v331_v14 }
  0x77   : > { %v336_v18 = vadd.f32 %v335_v16, %v333_v12  ;;  %vm337_vm2 = vcmp.le.f32.partialorder %v332_v17, 0.0 }
  0x78   : > { %v338_v19 = vsel %vm337_vm2, 0.0, %v319_v15 }
  0x79   : > { %v339_v20 = vmul.f32 %v338_v19, %v336_v18  ;;  %v351_v22 = vsel %vm340_vm3, %v338_v19, 0.0 }
  0x7b   : > { %v341_v21 = vsel %vm340_vm3, %v339_v20, 0.0 }
  0x7c   : > { %342 = vadd.xlane.f32.xlu0 %v341_v21 }
  0x80   : > { %352 = vadd.xlane.f32.xlu0 %v351_v22 }
 0x105   : > { %v343_v24 = vpop.xlane.xlu0 %342 }
 0x106   : > { %v344_v25 = vrot.slane %v343_v24, 4 }
 0x108   : > { %v345_v26 = vadd.f32 %v344_v25, %v343_v24 }
 0x109   : > { %v353_v27 = vpop.xlane.xlu0 %352 }
 0x10a   : > { %v346_v28 = vrot.slane %v345_v26, 2  ;;  %v354_v29 = vrot.slane %v353_v27, 4 }
 0x10c   : > { %v355_v30 = vadd.f32 %v354_v29, %v353_v27  ;;  %v347_v31 = vadd.f32 %v346_v28, %v345_v26 }
 0x10e   : > { %v356_v32 = vrot.slane %v355_v30, 2  ;;  %v348_v33 = vrot.slane %v347_v31, 1 }
 0x110   : > { %v357_v34 = vadd.f32 %v356_v32, %v355_v30  ;;  %v349_v35 = vadd.f32 %v348_v33, %v347_v31 }
 0x112   : > { %535 = vpush %v349_v35  ;;  %v358_v36 = vrot.slane %v357_v34, 1 }
 0x114   : > { %v359_v37 = vadd.f32 %v358_v36, %v357_v34 }
 0x116   : > { %537 = vpush %v359_v37 }
 0x143   : > { %s536_s18 = spop %535 }
 0x144   : > { %v369_v39 = vstv %s536_s18 }
 0x145   : > { %v370_v40 = vadd.f32 %v369_v39, %v368_v38 }
 0x147   : > { %372 = vst.msk [vmem:[%s311_s23] sm:$0x1] %vm365_vm4, %v370_v40  ;;  %s538_s30 = spop %537 }
 0x148   : > { %v374_v42 = vstv %s538_s30 }
 0x149   : > { %v375_v43 = vadd.f32 %v374_v42, %v373_v41 }
 0x14b   : > { %376 = vst.msk [vmem:[%s314_s7] sm:$0x1] %vm365_vm4, %v375_v43 }
 0x14c PF: > { %s21_s20 = sadd.s32 1, %s751_s20   ;;  %s951_s15 = smov %s735_s16 }
 0x14d   : > { %p18_p9 = scmp.ge.s32.totalorder %s21_s20, 4   ;;  %s952_s16 = smov %s739_s17 }
 0x14e   : > { %s953_s17 = smov %s831_s26  ;;  %s954_s18 = smov %s747_s19 }
 0x14f   : > { %s955_s19 = smov %s957_s22  ;;  %20 = sbr.rel (!%p18_p9) target bundleno = 9 (0x9), region = 113 }
 0x154   :  { %406 = vsyncpa [#allocation3], 1 }
 0x155   :  { %408 = vsyncpa [#allocation3 + $0x1], 1 }
 0x156   :  { %409 = vsyncpa [#allocation5], 1 }
 0x157   :  { %411 = vsyncpa [#allocation5 + $0x1], 1 }

</bundles_post_ra>
